<compile_context>
chip_gen: v5e
topology: v5e:2x2
jax: 0.10.0
libtpu: 0.0.40
codegen_flags: <defaults>
</compile_context>

<pallas_src>
import functools

import jax
import jax.numpy as jnp
from jax.experimental import pallas as pl
from jax.experimental.pallas import tpu as pltpu


def _round_up(n: int, m: int) -> int:
    return ((n + m - 1) // m) * m


def _round_down(n: int, m: int) -> int:
    return (n // m) * m


def _layernorm_kernel(x_ref, alpha_ref, bias_ref, o_ref, *, eps, features):
    # x_ref:     (TR, D) row tile
    # alpha_ref: (1, D)  resident scale
    # bias_ref:  (1, D)  resident shift
    x = x_ref[...].astype(jnp.float32)                               # (TR, D)
    mean = jnp.mean(x, axis=-1, keepdims=True)                       # (TR, 1)
    centered = x - mean
    # torch.std() default is UNBIASED -> divide by (features - 1).
    # (features == 1 yields nan, matching torch.)
    var = jnp.sum(centered * centered, axis=-1, keepdims=True) / (features - 1)
    std = jnp.sqrt(var)                                              # (TR, 1)
    # Per-row reciprocal (TR elements) instead of a (TR, D) elementwise divide.
    # approx=False keeps exact parity with the reference divide.
    inv = pl.reciprocal(std + eps, approx=False)                     # (TR, 1)
    alpha = alpha_ref[...].astype(jnp.float32)                       # (1, D)
    bias = bias_ref[...].astype(jnp.float32)                         # (1, D)
    y = alpha * (centered * inv) + bias
    o_ref[...] = y.astype(o_ref.dtype)


def layer_norm_forward(x: jnp.ndarray,
                       alpha: jnp.ndarray,
                       bias: jnp.ndarray,
                       eps: float = 1e-5,
                       *,
                       narrow_d_fallback: bool = True) -> jnp.ndarray:
    """x: (..., D), alpha/bias: (D,). Returns alpha*(x-mean)/(std+eps)+bias."""
    orig_shape = x.shape
    D = orig_shape[-1]
    assert alpha.shape == (D,) and bias.shape == (D,)

    # Lane-density guard: a non-multiple-of-128 feature dim forces masked
    # partial stores that waste most of the lane width; plain XLA is the
    # better choice there. (Pallas path is still correct if forced.)
    if narrow_d_fallback and D % 128 != 0:
        mean = jnp.mean(x, axis=-1, keepdims=True)
        std = jnp.std(x, axis=-1, keepdims=True, ddof=1)
        return alpha * (x - mean) / (std + eps) + bias

    n_rows = 1
    for s in orig_shape[:-1]:
        n_rows *= s

    x2 = x.reshape(n_rows, D)
    alpha2 = alpha.reshape(1, D)
    bias2 = bias.reshape(1, D)

    # Row-tile selection: ~4 MiB of f32-equivalent data per x tile (memory
    # bound; 2-4 MiB tiles sit on the pipelined-HBM roofline plateau).
    # tile_rows is always a multiple of 8 (sublane constraint); the ragged
    # last row tile is handled by Pallas via masked stores.
    target_bytes = 4 << 20
    if n_rows < 8:
        tile_rows = n_rows                       # block == full dim -> valid
    else:
        tile_rows = max(8, _round_down(target_bytes // max(1, D * 4), 8))
        if n_rows >= 16:
            # At least 2 grid steps so both v7x TensorCores get work.
            tile_rows = min(tile_rows, _round_up(pl.cdiv(n_rows, 2), 8))
        # Never exceed the largest multiple of 8 that fits in n_rows; this
        # also guarantees >= 2 grid steps for ragged (non-multiple-of-8) rows.
        tile_rows = min(tile_rows, _round_down(n_rows, 8))

    grid = (pl.cdiv(n_rows, tile_rows),)

    kernel = functools.partial(_layernorm_kernel, eps=eps, features=D)

    out = pl.pallas_call(
        kernel,
        out_shape=jax.ShapeDtypeStruct((n_rows, D), x.dtype),
        grid_spec=pltpu.PrefetchScalarGridSpec(
            num_scalar_prefetch=0,
            grid=grid,
            in_specs=[
                pl.BlockSpec((tile_rows, D), lambda i: (i, 0)),   # x row tile
                pl.BlockSpec((1, D), lambda i: (0, 0)),           # alpha (resident)
                pl.BlockSpec((1, D), lambda i: (0, 0)),           # bias  (resident)
            ],
            out_specs=pl.BlockSpec((tile_rows, D), lambda i: (i, 0)),
        ),
        compiler_params=pltpu.CompilerParams(
            dimension_semantics=("parallel",),
            # Big enough for 4 MiB tiles double-buffered + f32 temps on v5e's
            # small scoped default, while staying under v7x's 64 MiB physical.
            vmem_limit_bytes=48 * 1024 * 1024,
        ),
    )(x2, alpha2, bias2)

    return out.reshape(orig_shape)


if __name__ == "__main__":
    eps = 1e-5
    key = jax.random.PRNGKey(0)

    def reference(x, alpha, bias):
        mean = jnp.mean(x, axis=-1, keepdims=True)
        std = jnp.std(x, axis=-1, keepdims=True, ddof=1)
        return alpha * (x - mean) / (std + eps) + bias

    # (shape, narrow_d_fallback)
    cases = [
        ((2, 8, 128), True),    # lane-dense, 16 rows -> 2 grid steps (Pallas)
        ((3, 5, 128), True),    # 15 rows -> ragged last row tile     (Pallas)
        ((4, 64, 128), True),   # 256 rows -> multi-step grid         (Pallas)
        ((2, 8, 32), True),     # narrow D -> lane-density XLA fallback
        ((2, 8, 32), False),    # narrow D forced through the Pallas kernel
    ]

    for idx, (shape, fallback) in enumerate(cases):
        D = shape[-1]
        kx, ka, kb = jax.random.split(jax.random.fold_in(key, idx), 3)
        x = jax.random.normal(kx, shape, dtype=jnp.float32)
        # Module inits alpha=ones, bias=zeros; perturb so scale/shift paths
        # are actually exercised.
        alpha = jnp.ones((D,), jnp.float32) + 0.1 * jax.random.normal(
            ka, (D,), dtype=jnp.float32)
        bias = 0.1 * jax.random.normal(kb, (D,), dtype=jnp.float32)

        out = layer_norm_forward(x, alpha, bias, eps=eps,
                                 narrow_d_fallback=fallback)
        out = jax.block_until_ready(out)

        ref = reference(x, alpha, bias)
        assert out.shape == x.shape
        assert jnp.allclose(out, ref, atol=1e-5, rtol=1e-5), (
            f"mismatch vs reference for shape={shape}, fallback={fallback}")

    print("KERNEL_OK")
</pallas_src>

<mosaic_0001>
module attributes {stable_mosaic.version = 11 : i64} {
  func.func @_layernorm_kernel(%arg0: i32, %arg1: memref<8x128xf32, #tpu.memory_space<vmem>>, %arg2: memref<1x128xf32, #tpu.memory_space<vmem>>, %arg3: memref<1x128xf32, #tpu.memory_space<vmem>>, %arg4: memref<8x128xf32, #tpu.memory_space<vmem>>) attributes {dimension_semantics = [#tpu.dimension_semantics<parallel>], iteration_bounds = array<i64: 2>, scalar_prefetch = 0 : i64, scratch_operands = 0 : i64, tpu.core_type = #tpu.core_type<tc>, window_params = [{transform_indices = @transform_0, window_bounds = array<i64: 8, 128>}, {pipeline_mode = #tpu.pipeline_mode<synchronous>, transform_indices = @transform_1, window_bounds = array<i64: 1, 128>}, {pipeline_mode = #tpu.pipeline_mode<synchronous>, transform_indices = @transform_2, window_bounds = array<i64: 1, 128>}, {transform_indices = @transform_3, window_bounds = array<i64: 8, 128>}]} {
    %c0 = arith.constant 0 : index
    %c0_0 = arith.constant 0 : index
    %0 = vector.load %arg1[%c0, %c0_0] : memref<8x128xf32, #tpu.memory_space<vmem>>, vector<8x128xf32>
    %cst = arith.constant dense<0.000000e+00> : vector<8xf32>
    %1 = vector.multi_reduction <add>, %0, %cst [1] : vector<8x128xf32> to vector<8xf32>
    %2 = vector.shape_cast %1 : vector<8xf32> to vector<8x1xf32>
    %cst_1 = arith.constant 1.280000e+02 : f32
    %3 = vector.broadcast %cst_1 : f32 to vector<8x1xf32>
    %4 = arith.divf %2, %3 : vector<8x1xf32>
    %5 = vector.broadcast %4 : vector<8x1xf32> to vector<8x128xf32>
    %6 = arith.subf %0, %5 : vector<8x128xf32>
    %7 = arith.mulf %6, %6 : vector<8x128xf32>
    %cst_2 = arith.constant dense<0.000000e+00> : vector<8xf32>
    %8 = vector.multi_reduction <add>, %7, %cst_2 [1] : vector<8x128xf32> to vector<8xf32>
    %9 = vector.shape_cast %8 : vector<8xf32> to vector<8x1xf32>
    %cst_3 = arith.constant 1.270000e+02 : f32
    %10 = vector.broadcast %cst_3 : f32 to vector<8x1xf32>
    %11 = arith.divf %9, %10 : vector<8x1xf32>
    %12 = math.sqrt %11 : vector<8x1xf32>
    %cst_4 = arith.constant 9.99999974E-6 : f32
    %13 = vector.broadcast %cst_4 : f32 to vector<8x1xf32>
    %14 = arith.addf %12, %13 : vector<8x1xf32>
    %15 = tpu.reciprocal %14 : vector<8x1xf32> -> vector<8x1xf32>
    %c0_5 = arith.constant 0 : index
    %c0_6 = arith.constant 0 : index
    %16 = vector.load %arg2[%c0_5, %c0_6] : memref<1x128xf32, #tpu.memory_space<vmem>>, vector<1x128xf32>
    %c0_7 = arith.constant 0 : index
    %c0_8 = arith.constant 0 : index
    %17 = vector.load %arg3[%c0_7, %c0_8] : memref<1x128xf32, #tpu.memory_space<vmem>>, vector<1x128xf32>
    %18 = vector.broadcast %15 : vector<8x1xf32> to vector<8x128xf32>
    %19 = arith.mulf %6, %18 : vector<8x128xf32>
    %20 = vector.broadcast %16 : vector<1x128xf32> to vector<8x128xf32>
    %21 = arith.mulf %20, %19 : vector<8x128xf32>
    %22 = vector.broadcast %17 : vector<1x128xf32> to vector<8x128xf32>
    %23 = arith.addf %21, %22 : vector<8x128xf32>
    %c0_9 = arith.constant 0 : index
    %c0_10 = arith.constant 0 : index
    %24 = vector.load %arg4[%c0_9, %c0_10] : memref<8x128xf32, #tpu.memory_space<vmem>>, vector<8x128xf32>
    tpu.vector_store %arg4[%c0_9, %c0_10], %23 {strides = array<i32>} : memref<8x128xf32, #tpu.memory_space<vmem>>, vector<8x128xf32>,
    return
  }
  func.func @transform_0(%arg0: i32) -> (i32, i32) {
    %c0_i32 = arith.constant 0 : i32
    %c0_i32_0 = arith.constant 0 : i32
    return %arg0, %c0_i32 : i32, i32
  }
  func.func @transform_1(%arg0: i32) -> (i32, i32) {
    %c0_i32 = arith.constant 0 : i32
    %c0_i32_0 = arith.constant 0 : i32
    %c0_i32_1 = arith.constant 0 : i32
    return %c0_i32, %c0_i32_0 : i32, i32
  }
  func.func @transform_2(%arg0: i32) -> (i32, i32) {
    %c0_i32 = arith.constant 0 : i32
    %c0_i32_0 = arith.constant 0 : i32
    %c0_i32_1 = arith.constant 0 : i32
    return %c0_i32, %c0_i32_0 : i32, i32
  }
  func.func @transform_3(%arg0: i32) -> (i32, i32) {
    %c0_i32 = arith.constant 0 : i32
    %c0_i32_0 = arith.constant 0 : i32
    return %arg0, %c0_i32 : i32, i32
  }
}

</mosaic_0001>

<bundles_post_ra>
// kernel: tpu_custom_call.1
= control target key start
LH: loop header
LB: loop body
LE: loop exit
PB: predicated region body
PF: predicated region fallthrough
CT: control target
= control target key end

     0   :  { %8 = vsyncpa [#allocation3], 0  ;;  %s744_s0 = inlined_call_operand.hbm [shape: f32[16,128], index: 0, kind: input, shape index: {}]   ;;  %s745_s1 = inlined_call_operand.hbm [shape: f32[1,128], index: 1, kind: input, shape index: {}]   ;;  %s746_s2 = inlined_call_operand.vmem [shape: f32[1,128], index: 2, kind: input, shape index: {}]   ;;  %s747_s3 = inlined_call_operand.hbm [shape: f32[16,128], index: 3, kind: output, shape index: {}]  }
   0x1   :  { %10 = vsyncpa [#allocation3 + $0x1], 0 }
   0x2   :  { %11 = vsyncpa [#allocation6], 0 }
   0x3   :  { %12 = vsyncpa [#allocation4], 0 }
   0x4   :  { %14 = vsyncpa [#allocation4 + $0x1], 0  ;;  %s599_s12 = smov 0   ;;  %s601_s13 = smov 0  }
   0x5   :  { %s603_s14 = smov 0   ;;  %s605_s15 = smov 0  }
   0x6 LB: > { %s620_s16 = sadd.s32 4294967295, %s574_s15   ;;  %s361_s17 = sadd.s32 4294967294, %s574_s15   ;;  %s574_s15 = sphi %s605_s15, %s757_s15   ;;  %s570_s14 = sphi %s603_s14, %s756_s14   ;;  %s566_s13 = sphi %s601_s13, %s755_s13   ;;  %s562_s12 = sphi %s599_s12, %s754_s12  }
   0x7   : > { %p40_p0 = scmp.ne.s32.totalorder %s566_s13, %s562_s12  ;;  %p41_p1 = scmp.eq.s32.totalorder %s620_s16, 0 }
   0x8   : > { %p106_p2 = scmp.eq.s32.totalorder %s620_s16, 1  ;;  %p112_p3 = scmp.eq.s32.totalorder %s361_s17, 1 }
   0x9   : > { %p629_p4 = por %p41_p1, %p40_p0  ;;  %p362_p5 = scmp.ge.s32.totalorder %s574_s15, 1 }
   0xa   : > { %p634_p6 = por %p112_p3, %p40_p0  ;;  %p119_p7 = scmp.lt.s32.totalorder %s574_s15, 3 }
   0xb   : > { %s131_s22 = sshll.u32 %s745_s1, 4  ;;  %s576_s24 = smov [#allocation5]   ;;  %s132_s22 = int_to_ptr.hbm [resolvable:$true] %s131_s22 }
   0xc   : > { %p642_p8 = pnand %p362_p5, %p119_p7  ;;  %s133_s25 = sshll.u32 %s576_s24, 4  ;;  %s134_s25 = int_to_ptr.vmem [resolvable:$true] %s133_s25 }
   0xd   : > { %s652_s26 = sadd.s32 1, %s574_s15   ;;  %s27_s27 = sadd.s32 1, %s570_s14 }
   0xe   : > { %p383_p10 = pneg %p642_p8  ;;  %s24_s28 = ssub.s32 %s574_s15, %s652_s26 }
   0xf   : > { %p25_p12 = scmp.eq.s32.totalorder %s24_s28, 0  ;;  %p34_p13 = scmp.ne.s32.totalorder %s570_s14, %s566_s13 }
  0x10   : > { %p384_p11 = pnand %p383_p10, %p41_p1  ;;  %p35_p0 = scmp.eq.s32.totalorder %s574_s15, 0 }
  0x11   : > { %s661_s29 = scalar_select %p25_p12, %s570_s14, %s27_s27  }
  0x12   : > { %386 = dma.hbm_to_vmem [thread:$0]  (!%p384_p11), %s132_s22, 16, %s134_s25, [#allocation6]  }
  0x13   : > { %p665_p3 = por %p106_p2, %p34_p13  ;;  %p396_p5 = scmp.lt.s32.totalorder %s574_s15, 2 }
  0x14   : > { %s147_s4 = sand.u32 1, %s570_s14   ;;  %s366_s5 = sshll.u32 %s574_s15, 3 }
  0x15   : > { %p36_p7 = por %p35_p0, %p34_p13  ;;  %s365_s6 = sshll.u32 %s147_s4, 3 }
  0x16   : > { %s155_s9 = scalar_lea.hbm %s744_s0, %s366_s5  ;;  %s151_s11 = scalar_lea.vmem [#allocation2], %s365_s6 }
  0x17   : > { %s157_s10 = sshll.u32 %s155_s9, 4  ;;  %s159_s17 = sshll.u32 %s151_s11, 4  ;;  %s158_s10 = int_to_ptr.hbm [resolvable:$true] %s157_s10  ;;  %s160_s17 = int_to_ptr.vmem [resolvable:$true] %s159_s17 }
  0x18   : > { %p675_p10 = pnand %p396_p5, %p36_p7  ;;  %s148_s21 = scalar_lea.sflag [#allocation3], %s147_s4 }
  0x19   : > { %s474_s22 = sshra.s32 %s158_s10, 4  ;;  %s481_s28 = scalar_lea.hbm %s744_s0, 16  ;;  %s475_s22 = int_to_ptr.hbm [resolvable:$true] %s474_s22 }
  0x1a   : > { %s476_s24 = scalar_lea.hbm %s475_s22, 8  ;;  %p478_p11 = pneg %p675_p10 }
  0x1b   : > { %p477_p2 = scmp.ne.s32.totalorder %s475_s22, %s476_s24  ;;  %p482_p0 = scmp.lt.s32.totalorder %s475_s22, %s744_s0 }
  0x1c   : > { %p483_p5 = scmp.lt.s32.totalorder %s481_s28, %s476_s24 }
  0x1d   : > { %p479_p12 = pnand %p478_p11, %p477_p2 }
  0x1e   : > { %p484_p7 = por %p483_p5, %p482_p0 }
  0x1f   : > { %p480_p13 = pneg %p479_p12 }
  0x21   : > { %p485_p9 = pnand %p484_p7, %p480_p13 }
  0x23   : > { %488 = shalt.err (!%p485_p9)
}
  0x24   : > { %390 = dma.hbm_to_vmem [thread:$0]  (!%p675_p10), %s158_s10, 128, %s160_s17, %s148_s21  }
  0x25   : > { %168 = sbr.rel (%p642_p8) target bundleno = 335 (0x14f), region = 32  ;;  %s692_s4 = sand.u32 (!%p642_p8), 1, %s566_s13  }
  0x26   : > { %s368_s7 = sshll.u32 (!%p642_p8), %s692_s4, 3  ;;  %s171_s8 = scalar_lea.sflag (!%p642_p8), [#allocation3], %s692_s4 }
  0x27   : > { %s174_s9 = scalar_lea.vmem (!%p642_p8), [#allocation2], %s368_s7 }
  0x2a   : > { %549 = dma.done.wait (%p629_p4), %s171_s8, 128  }
  0x2b   : > { %551 = vsyncadd (%p629_p4), %s171_s8, 4294967168 }
  0x2c   : > { %553 = dma.done.wait (%p41_p1), [#allocation6], 16  }
  0x2d   : > { %555 = vsyncadd (%p41_p1), [#allocation6], 4294967280  ;;  %v203_v0 = vld [vmem:[%s174_s9] sm:$0xff]  ;;  %v577_v1 = vmov 128.0   ;;  %v578_v12 = vmov 127.0   ;;  %s372_s18 = sshll.u32 %s620_s16, 3 }
  0x2e   : > { %204 = vadd.xlane.f32.xlu0 %v203_v0  ;;  %436 = vrcp.f32 %v577_v1  ;;  %v434_v41 = vld [vmem:[#allocation5] ss:$0 sm:$0xff]  ;;  %s276_s11 = scalar_lea.hbm %s747_s3, %s372_s18  ;;  %v435_v44 = vld [vmem:[%s746_s2] ss:$0 sm:$0xff]  ;;  %s202_s16 = scalar_lea.vmem [#allocation7], %s368_s7 }
  0x2f   : > { %438 = vrcp.f32 %v578_v12  ;;  %s278_s21 = sshll.u32 %s202_s16, 4  ;;  %s280_s22 = sshll.u32 %s276_s11, 4  ;;  %s279_s21 = int_to_ptr.vmem [resolvable:$true] %s278_s21  ;;  %s281_s22 = int_to_ptr.hbm [resolvable:$true] %s280_s22 }
  0x30   : > { %s266_s24 = scalar_lea.sflag [#allocation4], %s692_s4  ;;  %s518_s25 = sshra.s32 %s281_s22, 4  ;;  %s519_s25 = int_to_ptr.hbm [resolvable:$true] %s518_s25 }
  0x31   : > { %s520_s27 = scalar_lea.hbm %s519_s25, 8  ;;  %s524_s6 = scalar_lea.hbm %s747_s3, 16 }
  0x32   : > { %p521_p1 = scmp.ne.s32.totalorder %s519_s25, %s520_s27  ;;  %p525_p9 = scmp.lt.s32.totalorder %s519_s25, %s747_s3 }
  0x33   : > { %p526_p10 = scmp.lt.s32.totalorder %s524_s6, %s520_s27 }
  0x34   : > { %v437_v2 = vpop.eup %436  ;;  %p522_p4 = pnand %p521_p1, %p665_p3 }
  0x35   : > { %v207_v3 = vmul.f32 128.0, %v437_v2  ;;  %vm211_vm0 = vweird.f32 %v437_v2  ;;  %v439_v13 = vpop.eup %438  ;;  %p527_p2 = por %p526_p10, %p525_p9 }
  0x36   : > { %v219_v14 = vmul.f32 127.0, %v439_v13  ;;  %vm223_vm1 = vweird.f32 %v439_v13  ;;  %p523_p8 = pneg %p522_p4 }
  0x37   : > { %v208_v4 = vsub.f32 1.0, %v207_v3 }
  0x38   : > { %v220_v15 = vsub.f32 1.0, %v219_v14  ;;  %p528_p11 = pnand %p527_p2, %p523_p8 }
  0x39   : > { %v209_v5 = vmul.f32 %v437_v2, %v208_v4 }
  0x3a   : > { %v221_v16 = vmul.f32 %v439_v13, %v220_v15 }
  0x3b   : > { %v210_v6 = vadd.f32 %v437_v2, %v209_v5 }
  0x3c   : > { %v222_v17 = vadd.f32 %v439_v13, %v221_v16 }
  0x3d   : > { %v212_v7 = vsel %vm211_vm0, %v437_v2, %v210_v6 }
  0x3e   : > { %v224_v18 = vsel %vm223_vm1, %v439_v13, %v222_v17 }
  0xa1   : > { %v205_v8 = vpop.xlane.xlu0 %204 }
  0xa2   : > { %v213_v9 = vmul.f32 %v212_v7, %v205_v8 }
  0xa4   : > { %v214_v10 = vsub.f32 %v203_v0, %v213_v9 }
  0xa6   : > { %v215_v11 = vmul.f32 %v214_v10, %v214_v10 }
  0xa8   : > { %216 = vadd.xlane.f32.xlu0 %v215_v11 }
 0x11b   : > { %v217_v19 = vpop.xlane.xlu0 %216 }
 0x11c   : > { %v225_v20 = vmul.f32 %v224_v18, %v217_v19 }
 0x11e   : > { %440 = vrsqrt.f32 %v225_v20  ;;  %vm233_vm2 = vcmp.eq.f32.partialorder %v225_v20, inf  ;;  %v236_v28 = vand.u32 2147483648, %v225_v20  ;;  %vm235_vm3 = vcmp.eq.f32.partialorder %v225_v20, 0.0 }
 0x124   : > { %v441_v21 = vpop.eup %440 }
 0x125   : > { %v227_v22 = vmul.f32 %v441_v21, %v225_v20 }
 0x127   : > { %v228_v23 = vmul.f32 %v441_v21, %v227_v22 }
 0x129   : > { %v229_v24 = vmul.f32 0.5, %v228_v23 }
 0x12b   : > { %v230_v25 = vsub.f32 1.5, %v229_v24 }
 0x12d   : > { %v231_v26 = vmul.f32 %v441_v21, %v230_v25 }
 0x12f   : > { %v232_v27 = vmul.f32 %v231_v26, %v225_v20 }
 0x131   : > { %v234_v29 = vsel %vm233_vm2, %v225_v20, %v232_v27 }
 0x132   : > { %v237_v30 = vsel %vm235_vm3, %v236_v28, %v234_v29 }
 0x133   : > { %v238_v31 = vadd.f32 1e-05, %v237_v30 }
 0x135   : > { %442 = vrcp.f32 %v238_v31  ;;  %v250_v35 = vand.u32 2147483648, %v238_v31  ;;  %v248_v37 = vand.u32 2147483647, %v238_v31  ;;  %vm244_vm5 = vweird.f32 %v238_v31 }
 0x137   : > { %v251_v39 = vor.u32 1.1754944e-38, %v250_v35  ;;  %vm249_vm7 = vcmp.eq.f32.partialorder %v248_v37, 8.507059e+37 }
 0x13b   : > { %v443_v32 = vpop.eup %442 }
 0x13c   : > { %v240_v33 = vmul.f32 %v443_v32, %v238_v31  ;;  %vm245_vm4 = vweird.f32 %v443_v32 }
 0x13d   : > { %vm246_vm6 = vmor %vm244_vm5, %vm245_vm4 }
 0x13e   : > { %v241_v34 = vsub.f32 1.0, %v240_v33 }
 0x140   : > { %v242_v36 = vmul.f32 %v443_v32, %v241_v34 }
 0x142   : > { %v243_v38 = vadd.f32 %v443_v32, %v242_v36 }
 0x144   : > { %v247_v40 = vsel %vm246_vm6, %v443_v32, %v243_v38 }
 0x145   : > { %v252_v42 = vsel %vm249_vm7, %v251_v39, %v247_v40 }
 0x146   : > { %v255_v43 = vmul.f32 %v252_v42, %v214_v10 }
 0x148   : > { %v259_v45 = vmul.f32 %v434_v41, %v255_v43 }
 0x14a   : > { %v263_v46 = vadd.f32 %v435_v44, %v259_v45 }
 0x14c   : > { %264 = vst [vmem:[%s202_s16] sm:$0xff] %v263_v46 }
 0x14d   : > { %531 = shalt.err (!%p528_p11)
}
 0x14e   : > { %381 = dma.vmem_to_hbm [thread:$0]  (%p665_p3), %s279_s21, 128, %s281_s22, %s266_s24  }
 0x14f PF: > { %s292_s4 = sand.u32 1, %s562_s12   ;;  %p753_p12 = scmp.ge.s32.totalorder %s574_s15, 2 }
 0x150   : > { %s293_s9 = scalar_lea.sflag [#allocation4], %s292_s4 }
 0x151   : > { %p392_p13 = pnand %p753_p12, %p634_p6 }
 0x153   : > { %p393_p0 = pneg %p392_p13 }
 0x155   : > { %557 = dma.done.wait (%p393_p0), %s293_s9, 128  }
 0x156   : > { %559 = vsyncadd (%p393_p0), %s293_s9, 4294967168  ;;  %p17_p5 = scmp.ge.s32.totalorder %s652_s26, 4   ;;  %s754_s12 = smov %s566_s13 }
 0x157   : > { %s755_s13 = smov %s570_s14  ;;  %s756_s14 = smov %s661_s29 }
 0x158   : > { %s757_s15 = smov %s652_s26  ;;  %19 = sbr.rel (!%p17_p5) target bundleno = 6 (0x6), region = 81 }
 0x15d   :  { %299 = vsyncpa [#allocation3], 1 }
 0x15e   :  { %301 = vsyncpa [#allocation3 + $0x1], 1 }
 0x15f   :  { %302 = vsyncpa [#allocation6], 1 }
 0x160   :  { %303 = vsyncpa [#allocation4], 1 }
 0x161   :  { %305 = vsyncpa [#allocation4 + $0x1], 1 }

</bundles_post_ra>
